<compile_context>
chip_gen: v7x
topology: tpu7x:2x2x1
jax: 0.10.0
libtpu: 0.0.40
codegen_flags: <defaults>
</compile_context>

<pallas_src>
import math

import jax
import jax.numpy as jnp
import numpy as np
from jax.experimental import pallas as pl
from jax.experimental.pallas import tpu as pltpu

STATE_DIM = 16
H1, H2 = 400, 300            # logical hidden sizes (PyTorch module)
H1_PAD, H2_PAD = 512, 384    # lane-aligned padded hidden sizes
OUT_PAD = 128                # lane-dense padded output width
TILE_B_MAX = 512             # batch tile cap (fits v7x 64 MiB VMEM comfortably)


def _round_up(x, m):
    return ((x + m - 1) // m) * m


def _pad_to(x, shape):
    return jnp.pad(x, [(0, t - s) for s, t in zip(x.shape, shape)])


# ---------------------------------------------------------------------------
# Kernel: one batch tile, all weights resident in VMEM.
# ---------------------------------------------------------------------------
def actor_kernel(x_ref, w1_ref, b1_ref, w2_ref, b2_ref, w3_ref, b3_ref, out_ref):
    # Layer 1 (normalization already folded into w1/b1).
    x = x_ref[...].astype(jnp.bfloat16)
    a = jnp.dot(x, w1_ref[...], preferred_element_type=jnp.float32) + b1_ref[...]
    a = jnp.maximum(a, 0.0)

    # Layer 2.
    a = jnp.dot(a.astype(jnp.bfloat16), w2_ref[...],
                preferred_element_type=jnp.float32) + b2_ref[...]
    a = jnp.maximum(a, 0.0)

    # Layer 3 (output columns >= action_dim are exactly zero by construction).
    y = jnp.dot(a.astype(jnp.bfloat16), w3_ref[...],
                preferred_element_type=jnp.float32) + b3_ref[...]

    # F.normalize: y / max(||y||, 1e-12)  ==  y * rsqrt(max(||y||^2, 1e-24)).
    sumsq = jnp.sum(y * y, axis=-1, keepdims=True)
    out_ref[...] = y * jax.lax.rsqrt(jnp.maximum(sumsq, 1e-24))


# ---------------------------------------------------------------------------
# Wrapper: fold, pad, quantize params once; tile the batch at call time.
# ---------------------------------------------------------------------------
def prepare_params(params, weight_dtype=jnp.bfloat16):
    """Fold simple_normalize into layer 1, zero-pad to lane-aligned shapes,
    and cast weight matrices to `weight_dtype` (biases stay f32)."""
    mins, maxes = params["mins"], params["maxes"]          # (1, 16) each
    inv_range = 1.0 / (maxes - mins)                       # (1, 16)
    w1f = params["w1"] * inv_range.T                       # (16, H1)
    b1f = params["b1"] - (mins * inv_range) @ params["w1"]  # (1, H1)

    action_dim = params["w3"].shape[1]
    assert action_dim <= OUT_PAD

    return {
        "action_dim": action_dim,
        "w1": _pad_to(w1f, (STATE_DIM, H1_PAD)).astype(weight_dtype),
        "b1": _pad_to(b1f, (1, H1_PAD)).astype(jnp.float32),
        "w2": _pad_to(params["w2"], (H1_PAD, H2_PAD)).astype(weight_dtype),
        "b2": _pad_to(params["b2"], (1, H2_PAD)).astype(jnp.float32),
        "w3": _pad_to(params["w3"], (H2_PAD, OUT_PAD)).astype(weight_dtype),
        "b3": _pad_to(params["b3"], (1, OUT_PAD)).astype(jnp.float32),
    }


def actor_forward(state, prep):
    """state: [B, STATE_DIM] float32; prep: output of prepare_params."""
    B = state.shape[0]
    action_dim = prep["action_dim"]

    tile_b = min(TILE_B_MAX, _round_up(max(B, 8), 8))
    b_pad = _round_up(B, tile_b)
    if b_pad != B:
        state = jnp.pad(state, ((0, b_pad - B), (0, 0)))
    grid = (b_pad // tile_b,)

    out = pl.pallas_call(
        actor_kernel,
        out_shape=jax.ShapeDtypeStruct((b_pad, OUT_PAD), jnp.float32),
        grid=grid,
        in_specs=[
            pl.BlockSpec((tile_b, STATE_DIM), lambda i: (i, 0)),
            # Weights/biases: constant index_map -> resident in VMEM across tiles.
            pl.BlockSpec((STATE_DIM, H1_PAD), lambda i: (0, 0)),
            pl.BlockSpec((1, H1_PAD), lambda i: (0, 0)),
            pl.BlockSpec((H1_PAD, H2_PAD), lambda i: (0, 0)),
            pl.BlockSpec((1, H2_PAD), lambda i: (0, 0)),
            pl.BlockSpec((H2_PAD, OUT_PAD), lambda i: (0, 0)),
            pl.BlockSpec((1, OUT_PAD), lambda i: (0, 0)),
        ],
        out_specs=pl.BlockSpec((tile_b, OUT_PAD), lambda i: (i, 0)),
        compiler_params=pltpu.CompilerParams(dimension_semantics=("parallel",)),
    )(state, prep["w1"], prep["b1"], prep["w2"], prep["b2"], prep["w3"], prep["b3"])

    return out[:B, :action_dim]


# ---------------------------------------------------------------------------
# Parameter construction (mirrors PyTorch init) and references.
# ---------------------------------------------------------------------------
def kaiming_uniform(key, fan_in, fan_out):
    # torch.nn.init.kaiming_uniform_(a=0, mode='fan_in', nonlinearity='leaky_relu')
    bound = math.sqrt(2.0) * math.sqrt(3.0 / fan_in)
    return jax.random.uniform(key, (fan_in, fan_out), jnp.float32, -bound, bound)


def linear_bias(key, fan_in, fan_out):
    bound = 1.0 / math.sqrt(fan_in)
    return jax.random.uniform(key, (1, fan_out), jnp.float32, -bound, bound)


def make_params(key, action_dim):
    k1, k2, k3, k4, k5, k6 = jax.random.split(key, 6)
    maxes = jnp.array([0.2, 0.35, 0.1, 1, 1, 1, 1, np.pi / 2, 0, np.pi / 2,
                       np.pi, 1, 1, 1, 0.5, 0.5], dtype=jnp.float32)[None, :]
    mins = jnp.array([-0.2, -0.05, 0.0, 0, 0, 0, 0, -np.pi / 2, -np.pi,
                      -np.pi / 2, 0, 0, 0, 0, -0.01, -0.01], dtype=jnp.float32)[None, :]
    return {
        "mins": mins, "maxes": maxes,
        "w1": kaiming_uniform(k1, STATE_DIM, H1), "b1": linear_bias(k2, STATE_DIM, H1),
        "w2": kaiming_uniform(k3, H1, H2),        "b2": linear_bias(k4, H1, H2),
        "w3": kaiming_uniform(k5, H2, action_dim), "b3": linear_bias(k6, H2, action_dim),
    }


def reference_forward(state, params):
    """Original-module semantics in full f32 (HIGHEST matmul precision)."""
    hp = jax.lax.Precision.HIGHEST
    x = (state - params["mins"]) / (params["maxes"] - params["mins"])
    a = jnp.maximum(jnp.dot(x, params["w1"], precision=hp) + params["b1"], 0.0)
    a = jnp.maximum(jnp.dot(a, params["w2"], precision=hp) + params["b2"], 0.0)
    y = jnp.dot(a, params["w3"], precision=hp) + params["b3"]
    norm = jnp.sqrt(jnp.sum(y * y, axis=-1, keepdims=True))
    return y / jnp.maximum(norm, 1e-12)


def prepared_reference(state, prep):
    """Pure-JAX mirror of exactly what the kernel computes (same folded/padded
    bf16 weights, same op order) — tight check of the kernel itself."""
    x = state.astype(jnp.bfloat16)
    a = jnp.dot(x, prep["w1"], preferred_element_type=jnp.float32) + prep["b1"]
    a = jnp.maximum(a, 0.0)
    a = jnp.dot(a.astype(jnp.bfloat16), prep["w2"],
                preferred_element_type=jnp.float32) + prep["b2"]
    a = jnp.maximum(a, 0.0)
    y = jnp.dot(a.astype(jnp.bfloat16), prep["w3"],
                preferred_element_type=jnp.float32) + prep["b3"]
    inv = jax.lax.rsqrt(jnp.maximum(jnp.sum(y * y, axis=-1, keepdims=True), 1e-24))
    return (y * inv)[:, : prep["action_dim"]]


if __name__ == "__main__":
    key = jax.random.PRNGKey(0)
    pkey, skey = jax.random.split(key)

    batch = 8
    action_dim = 4

    params = make_params(pkey, action_dim)
    prep = prepare_params(params)               # fold + pad + bf16, done once
    state = jax.random.uniform(skey, (batch, STATE_DIM), jnp.float32, -1.0, 1.0)

    out = actor_forward(state, prep)
    out = jax.block_until_ready(out)

    # Tight check: kernel matches its pure-JAX mirror (same prepared params).
    mirror = prepared_reference(state, prep)
    np.testing.assert_allclose(np.asarray(out), np.asarray(mirror),
                               rtol=1e-4, atol=1e-4)

    # Semantic check vs. the original f32 module: within the bf16-weight envelope.
    ref = reference_forward(state, params)
    np.testing.assert_allclose(np.asarray(out), np.asarray(ref),
                               rtol=5e-2, atol=5e-2)

    print("KERNEL_OK")
</pallas_src>

<mosaic_0001>
module attributes {stable_mosaic.version = 11 : i64} {
  func.func @actor_kernel(%arg0: i32, %arg1: memref<8x16xf32, #tpu.memory_space<vmem>>, %arg2: memref<16x512xbf16, #tpu.memory_space<vmem>>, %arg3: memref<1x512xf32, #tpu.memory_space<vmem>>, %arg4: memref<512x384xbf16, #tpu.memory_space<vmem>>, %arg5: memref<1x384xf32, #tpu.memory_space<vmem>>, %arg6: memref<384x128xbf16, #tpu.memory_space<vmem>>, %arg7: memref<1x128xf32, #tpu.memory_space<vmem>>, %arg8: memref<8x128xf32, #tpu.memory_space<vmem>>) attributes {dimension_semantics = [#tpu.dimension_semantics<parallel>], iteration_bounds = array<i64: 1>, scalar_prefetch = 0 : i64, scratch_operands = 0 : i64, tpu.core_type = #tpu.core_type<tc>, window_params = [{transform_indices = @transform_0, window_bounds = array<i64: 8, 16>}, {pipeline_mode = #tpu.pipeline_mode<synchronous>, transform_indices = @transform_1, window_bounds = array<i64: 16, 512>}, {pipeline_mode = #tpu.pipeline_mode<synchronous>, transform_indices = @transform_2, window_bounds = array<i64: 1, 512>}, {pipeline_mode = #tpu.pipeline_mode<synchronous>, transform_indices = @transform_3, window_bounds = array<i64: 512, 384>}, {pipeline_mode = #tpu.pipeline_mode<synchronous>, transform_indices = @transform_4, window_bounds = array<i64: 1, 384>}, {pipeline_mode = #tpu.pipeline_mode<synchronous>, transform_indices = @transform_5, window_bounds = array<i64: 384, 128>}, {pipeline_mode = #tpu.pipeline_mode<synchronous>, transform_indices = @transform_6, window_bounds = array<i64: 1, 128>}, {transform_indices = @transform_7, window_bounds = array<i64: 8, 128>}]} {
    %c0 = arith.constant 0 : index
    %c0_0 = arith.constant 0 : index
    %0 = vector.load %arg1[%c0, %c0_0] : memref<8x16xf32, #tpu.memory_space<vmem>>, vector<8x16xf32>
    %1 = arith.truncf %0 : vector<8x16xf32> to vector<8x16xbf16>
    %c0_1 = arith.constant 0 : index
    %c0_2 = arith.constant 0 : index
    %2 = vector.load %arg2[%c0_1, %c0_2] : memref<16x512xbf16, #tpu.memory_space<vmem>>, vector<16x512xbf16>
    %cst = arith.constant dense<0.000000e+00> : vector<8x512xf32>
    %3 = tpu.matmul %1, %2, %cst {dimension_numbers = #tpu.dot_dimension_numbers<[1], [0], [0], [1], [0, 0, 1, 1], [], []>} : vector<8x16xbf16>, vector<16x512xbf16>, vector<8x512xf32> -> vector<8x512xf32>
    %c0_3 = arith.constant 0 : index
    %c0_4 = arith.constant 0 : index
    %4 = vector.load %arg3[%c0_3, %c0_4] : memref<1x512xf32, #tpu.memory_space<vmem>>, vector<1x512xf32>
    %5 = vector.broadcast %4 : vector<1x512xf32> to vector<8x512xf32>
    %6 = arith.addf %3, %5 : vector<8x512xf32>
    %cst_5 = arith.constant 0.000000e+00 : f32
    %7 = vector.broadcast %cst_5 : f32 to vector<8x512xf32>
    %8 = arith.maximumf %6, %7 : vector<8x512xf32>
    %9 = arith.truncf %8 : vector<8x512xf32> to vector<8x512xbf16>
    %c0_6 = arith.constant 0 : index
    %c0_7 = arith.constant 0 : index
    %10 = vector.load %arg4[%c0_6, %c0_7] : memref<512x384xbf16, #tpu.memory_space<vmem>>, vector<512x384xbf16>
    %cst_8 = arith.constant dense<0.000000e+00> : vector<8x384xf32>
    %11 = tpu.matmul %9, %10, %cst_8 {dimension_numbers = #tpu.dot_dimension_numbers<[1], [0], [0], [1], [0, 0, 1, 1], [], []>} : vector<8x512xbf16>, vector<512x384xbf16>, vector<8x384xf32> -> vector<8x384xf32>
    %c0_9 = arith.constant 0 : index
    %c0_10 = arith.constant 0 : index
    %12 = vector.load %arg5[%c0_9, %c0_10] : memref<1x384xf32, #tpu.memory_space<vmem>>, vector<1x384xf32>
    %13 = vector.broadcast %12 : vector<1x384xf32> to vector<8x384xf32>
    %14 = arith.addf %11, %13 : vector<8x384xf32>
    %cst_11 = arith.constant 0.000000e+00 : f32
    %15 = vector.broadcast %cst_11 : f32 to vector<8x384xf32>
    %16 = arith.maximumf %14, %15 : vector<8x384xf32>
    %17 = arith.truncf %16 : vector<8x384xf32> to vector<8x384xbf16>
    %c0_12 = arith.constant 0 : index
    %c0_13 = arith.constant 0 : index
    %18 = vector.load %arg6[%c0_12, %c0_13] : memref<384x128xbf16, #tpu.memory_space<vmem>>, vector<384x128xbf16>
    %cst_14 = arith.constant dense<0.000000e+00> : vector<8x128xf32>
    %19 = tpu.matmul %17, %18, %cst_14 {dimension_numbers = #tpu.dot_dimension_numbers<[1], [0], [0], [1], [0, 0, 1, 1], [], []>} : vector<8x384xbf16>, vector<384x128xbf16>, vector<8x128xf32> -> vector<8x128xf32>
    %c0_15 = arith.constant 0 : index
    %c0_16 = arith.constant 0 : index
    %20 = vector.load %arg7[%c0_15, %c0_16] : memref<1x128xf32, #tpu.memory_space<vmem>>, vector<1x128xf32>
    %21 = vector.broadcast %20 : vector<1x128xf32> to vector<8x128xf32>
    %22 = arith.addf %19, %21 : vector<8x128xf32>
    %23 = arith.mulf %22, %22 : vector<8x128xf32>
    %cst_17 = arith.constant dense<0.000000e+00> : vector<8xf32>
    %24 = vector.multi_reduction <add>, %23, %cst_17 [1] : vector<8x128xf32> to vector<8xf32>
    %25 = vector.shape_cast %24 : vector<8xf32> to vector<8x1xf32>
    %cst_18 = arith.constant 1.000000e-24 : f32
    %26 = vector.broadcast %cst_18 : f32 to vector<8x1xf32>
    %27 = arith.maximumf %25, %26 : vector<8x1xf32>
    %28 = math.rsqrt %27 : vector<8x1xf32>
    %29 = vector.broadcast %28 : vector<8x1xf32> to vector<8x128xf32>
    %30 = arith.mulf %22, %29 : vector<8x128xf32>
    %c0_19 = arith.constant 0 : index
    %c0_20 = arith.constant 0 : index
    %31 = vector.load %arg8[%c0_19, %c0_20] : memref<8x128xf32, #tpu.memory_space<vmem>>, vector<8x128xf32>
    tpu.vector_store %arg8[%c0_19, %c0_20], %30 {strides = array<i32>} : memref<8x128xf32, #tpu.memory_space<vmem>>, vector<8x128xf32>,
    return
  }
  func.func @transform_0(%arg0: i32) -> (i32, i32) {
    %c0_i32 = arith.constant 0 : i32
    %c0_i32_0 = arith.constant 0 : i32
    return %arg0, %c0_i32 : i32, i32
  }
  func.func @transform_1(%arg0: i32) -> (i32, i32) {
    %c0_i32 = arith.constant 0 : i32
    %c0_i32_0 = arith.constant 0 : i32
    %c0_i32_1 = arith.constant 0 : i32
    return %c0_i32, %c0_i32_0 : i32, i32
  }
  func.func @transform_2(%arg0: i32) -> (i32, i32) {
    %c0_i32 = arith.constant 0 : i32
    %c0_i32_0 = arith.constant 0 : i32
    %c0_i32_1 = arith.constant 0 : i32
    return %c0_i32, %c0_i32_0 : i32, i32
  }
  func.func @transform_3(%arg0: i32) -> (i32, i32) {
    %c0_i32 = arith.constant 0 : i32
    %c0_i32_0 = arith.constant 0 : i32
    %c0_i32_1 = arith.constant 0 : i32
    return %c0_i32, %c0_i32_0 : i32, i32
  }
  func.func @transform_4(%arg0: i32) -> (i32, i32) {
    %c0_i32 = arith.constant 0 : i32
    %c0_i32_0 = arith.constant 0 : i32
    %c0_i32_1 = arith.constant 0 : i32
    return %c0_i32, %c0_i32_0 : i32, i32
  }
  func.func @transform_5(%arg0: i32) -> (i32, i32) {
    %c0_i32 = arith.constant 0 : i32
    %c0_i32_0 = arith.constant 0 : i32
    %c0_i32_1 = arith.constant 0 : i32
    return %c0_i32, %c0_i32_0 : i32, i32
  }
  func.func @transform_6(%arg0: i32) -> (i32, i32) {
    %c0_i32 = arith.constant 0 : i32
    %c0_i32_0 = arith.constant 0 : i32
    %c0_i32_1 = arith.constant 0 : i32
    return %c0_i32, %c0_i32_0 : i32, i32
  }
  func.func @transform_7(%arg0: i32) -> (i32, i32) {
    %c0_i32 = arith.constant 0 : i32
    %c0_i32_0 = arith.constant 0 : i32
    return %arg0, %c0_i32 : i32, i32
  }
}

</mosaic_0001>

<bundles_post_ra>
// kernel: tpu_custom_call.1
= control target key start
LH: loop header
LB: loop body
LE: loop exit
PB: predicated region body
PF: predicated region fallthrough
CT: control target
= control target key end

     0   :  { %12 = vsyncpa [#allocation3], 0  ;;  %s2021_s0 = inlined_call_operand.hbm [shape: f32[8,16], index: 0, kind: input, shape index: {}]   ;;  %s2022_s1 = inlined_call_operand.hbm [shape: bf16[16,512], index: 1, kind: input, shape index: {}]   ;;  %s2023_s2 = inlined_call_operand.vmem [shape: f32[1,512], index: 2, kind: input, shape index: {}]   ;;  %s2024_s3 = inlined_call_operand.hbm [shape: bf16[512,384], index: 3, kind: input, shape index: {}]   ;;  %s2025_s4 = inlined_call_operand.vmem [shape: f32[1,384], index: 4, kind: input, shape index: {}]   ;;  %s2026_s5 = inlined_call_operand.hbm [shape: bf16[384,128], index: 5, kind: input, shape index: {}]   ;;  %s2027_s6 = inlined_call_operand.vmem [shape: f32[1,128], index: 6, kind: input, shape index: {}]   ;;  %s2028_s7 = inlined_call_operand.hbm [shape: f32[8,128], index: 7, kind: output, shape index: {}]  }
   0x1   :  { %13 = vsyncpa [#allocation6], 0 }
   0x2   :  { %14 = vsyncpa [#allocation9], 0 }
   0x3   :  { %15 = vsyncpa [#allocation4], 0  ;;  %s1871_s24 = smov [#allocation5]   ;;  %s1753_s28 = scalar_lea.hbm %s2022_s1, 512 }
   0x4   :  { %s31_s25 = sshll.u32 %s1871_s24, 4  ;;  %p1754_p0 = scmp.ne.s32.totalorder %s2022_s1, %s1753_s28  ;;  %s32_s25 = int_to_ptr.vmem [resolvable:$true] %s31_s25 }
   0x5   :  { %p1757_p1 = scmp.lt.u32.totalorder %s1753_s28, %s2022_s1 }
   0x7   :  { %p1759_p2 = pnand %p1757_p1, %p1754_p0 }
   0x9   :  { %1762 = shalt.err (!%p1759_p2)
}
   0xa   :  { %s1763_s10 = scalar_lea.vmem %s32_s25, 512  ;;  %p1768_p4 = scmp.lt.s32.totalorder %s32_s25, %s32_s25 }
   0xb   :  { %p1764_p3 = scmp.ne.s32.totalorder %s32_s25, %s1763_s10  ;;  %p1769_p5 = scmp.lt.s32.totalorder %s1763_s10, %s1763_s10 }
   0xd   :  { %p1770_p6 = por %p1769_p5, %p1768_p4 }
   0xf   :  { %p1771_p7 = pnand %p1770_p6, %p1764_p3 }
  0x11   :  { %1774 = shalt.err (!%p1771_p7)
}
  0x12   :  { %s1872_s11 = smov 256   ;;  %s1873_s12 = smov 16  }
  0x13   :  { %37 = dma.hbm_to_vmem [thread:$0]  %s2022_s1, 512, %s32_s25, [#allocation6], %s1872_s11, %s1872_s11, %s1873_s12  }
  0x14   :  { %s1874_s15 = smov [#allocation2]   ;;  %s1875_s17 = smov [#allocation7]  }
  0x15   :  { %s22_s16 = sshll.u32 %s1874_s15, 4  ;;  %s45_s18 = sshll.u32 %s1875_s17, 4  ;;  %s23_s16 = int_to_ptr.vmem [resolvable:$true] %s22_s16  ;;  %s46_s18 = int_to_ptr.vmem [resolvable:$true] %s45_s18 }
  0x16   :  { %s1775_s21 = scalar_lea.hbm %s2021_s0, 128 }
  0x17   :  { %p1776_p8 = scmp.ne.s32.totalorder %s2021_s0, %s1775_s21  ;;  %p1779_p9 = scmp.lt.u32.totalorder %s1775_s21, %s2021_s0 }
  0x19   :  { %p1781_p10 = pnand %p1779_p9, %p1776_p8 }
  0x1b   :  { %1784 = shalt.err (!%p1781_p10)
}
  0x1c   :  { %s1785_s1 = scalar_lea.vmem %s23_s16, 128  ;;  %p1790_p12 = scmp.lt.s32.totalorder %s23_s16, %s23_s16 }
  0x1d   :  { %p1786_p11 = scmp.ne.s32.totalorder %s23_s16, %s1785_s1  ;;  %p1791_p13 = scmp.lt.s32.totalorder %s1785_s1, %s1785_s1 }
  0x1f   :  { %p1792_p0 = por %p1791_p13, %p1790_p12 }
  0x21   :  { %p1793_p1 = pnand %p1792_p0, %p1786_p11 }
  0x23   :  { %1796 = shalt.err (!%p1793_p1)
}
  0x24   :  { %25 = dma.hbm_to_vmem [thread:$0]  %s2021_s0, 128, %s23_s16, [#allocation3]  }
  0x25   :  { %s1797_s30 = scalar_lea.hbm %s2024_s3, 12288 }
  0x26   :  { %p1798_p2 = scmp.ne.s32.totalorder %s2024_s3, %s1797_s30  ;;  %p1801_p3 = scmp.lt.u32.totalorder %s1797_s30, %s2024_s3 }
  0x28   :  { %p1803_p4 = pnand %p1801_p3, %p1798_p2 }
  0x2a   :  { %1806 = shalt.err (!%p1803_p4)
}
  0x2b   :  { %s1807_s12 = scalar_lea.vmem %s46_s18, 12288  ;;  %p1812_p6 = scmp.lt.s32.totalorder %s46_s18, %s46_s18 }
  0x2c   :  { %p1808_p5 = scmp.ne.s32.totalorder %s46_s18, %s1807_s12  ;;  %p1813_p7 = scmp.lt.s32.totalorder %s1807_s12, %s1807_s12 }
  0x2e   :  { %p1814_p8 = por %p1813_p7, %p1812_p6 }
  0x30   :  { %p1815_p9 = pnand %p1814_p8, %p1808_p5 }
  0x32   :  { %1818 = shalt.err (!%p1815_p9)
}
  0x33   :  { %s1876_s0 = smov 192   ;;  %s1877_s13 = smov 12  }
  0x34   :  { %51 = dma.hbm_to_vmem [thread:$0]  %s2024_s3, 12288, %s46_s18, [#allocation6], %s1876_s0, %s1876_s0, %s1877_s13  }
  0x35   :  { %s1878_s16 = smov [#allocation8]   ;;  %s1819_s21 = scalar_lea.hbm %s2026_s5, 3072 }
  0x36   :  { %s59_s17 = sshll.u32 %s1878_s16, 4  ;;  %p1820_p10 = scmp.ne.s32.totalorder %s2026_s5, %s1819_s21  ;;  %s60_s17 = int_to_ptr.vmem [resolvable:$true] %s59_s17 }
  0x37   :  { %p1823_p11 = scmp.lt.u32.totalorder %s1819_s21, %s2026_s5 }
  0x39   :  { %p1825_p12 = pnand %p1823_p11, %p1820_p10 }
  0x3b   :  { %1828 = shalt.err (!%p1825_p12)
}
  0x3c   :  { %s1829_s1 = scalar_lea.vmem %s60_s17, 3072  ;;  %p1834_p0 = scmp.lt.s32.totalorder %s60_s17, %s60_s17 }
  0x3d   :  { %p1830_p13 = scmp.ne.s32.totalorder %s60_s17, %s1829_s1  ;;  %p1835_p1 = scmp.lt.s32.totalorder %s1829_s1, %s1829_s1 }
  0x3f   :  { %p1836_p2 = por %p1835_p1, %p1834_p0 }
  0x41   :  { %p1837_p3 = pnand %p1836_p2, %p1830_p13 }
  0x43   :  { %1840 = shalt.err (!%p1837_p3)
}
  0x44   :  { %s1879_s3 = smov 64   ;;  %s1880_s18 = smov 4  }
  0x45   :  { %65 = dma.hbm_to_vmem [thread:$0]  %s2026_s5, 3072, %s60_s17, [#allocation9], %s1879_s3, %s1879_s3, %s1880_s18  }
  0x46   :  { %1863 = dma.done.wait [#allocation3], 128  }
  0x47   :  { %1864 = vsyncadd [#allocation3], 4294967168 }
  0x48   :  { %1865 = dma.done.wait [#allocation6], 12800  }
  0x49   :  { %1866 = vsyncadd [#allocation6], 4294954496 }
  0x4a   :  { %1867 = dma.done.wait [#allocation9], 3072  }
  0x4b   :  { %1868 = vsyncadd [#allocation9], 4294964224  ;;  %v1881_v0 = vmov 0   ;;  %v1593_v1 = vld [vmem:[#allocation5 + $0x4] ss:$16 sps:$4 sm:$0xff]   ;;  %v81_v3 = vld [vmem:[#allocation2] sm:$0xff]  ;;  %v89_v57 = vlaneseq }
  0x4c   :  { %165 = vmatprep.mubr.bf16.mxu0 %v1881_v0  ;;  %206 = vmatprep.mubr.bf16.mxu1 %v1881_v0  ;;  %v1595_v2 = vld [vmem:[#allocation5] ss:$16 sps:$4 sm:$0xff]   ;;  %v82_v4 = vpack.c.bf16 %v81_v3, %v81_v3  ;;  %v1596_v5 = vld [vmem:[#allocation5 + $0xc] ss:$16 sps:$4 sm:$0xff]   ;;  %v1598_v6 = vld [vmem:[#allocation5 + $0x8] ss:$16 sps:$4 sm:$0xff]  }
  0x4d   :  { %133 = vmatprep.subr.bf16.mxu0 %v1593_v1  ;;  %vm129_vm0 = vcmask 130048   ;;  %v1599_v7 = vld [vmem:[#allocation7] ss:$12 sps:$4 sm:$0xff]   ;;  %174 = vmatprep.subr.bf16.mxu1 %v1596_v5  ;;  %v1601_v8 = vld [vmem:[#allocation7 + $0x4] ss:$12 sps:$4 sm:$0xff]   ;;  %v1973_v58 = vshrl.u32 %v89_v57, 7 }
  0x4e   :  { %134 = vmatpush1.bf16.msra.mxu0 %v1595_v2  ;;  %175 = vmatpush1.bf16.msra.mxu1 %v1598_v6  ;;  %v1604_v9 = vld [vmem:[#allocation7 + $0x1c] ss:$12 sps:$4 sm:$0xff]   ;;  %v1602_v10 = vld [vmem:[#allocation7 + $0x18] ss:$12 sps:$4 sm:$0xff]   ;;  %v1607_v11 = vld [vmem:[#allocation7 + $0x34] ss:$12 sps:$4 sm:$0xff]  }
  0x4f   :  { %880 = vmatprep.subr.bf16.mxu0 %v1601_v8  ;;  %v1605_v12 = vld [vmem:[#allocation7 + $0x30] ss:$12 sps:$4 sm:$0xff]   ;;  %v1610_v13 = vld [vmem:[#allocation7 + $0x4c] ss:$12 sps:$4 sm:$0xff]   ;;  %v1608_v14 = vld [vmem:[#allocation7 + $0x48] ss:$12 sps:$4 sm:$0xff]  }
  0x50   :  { %v1613_v15 = vld [vmem:[#allocation7 + $0x64] ss:$12 sps:$4 sm:$0xff]   ;;  %v1626_v16 = vld [vmem:[#allocation7 + $0xc8] ss:$12 sps:$4 sm:$0xff]   ;;  %v1611_v18 = vld [vmem:[#allocation7 + $0x60] ss:$12 sps:$4 sm:$0xff]  }
  0x51   :  { %1355 = vmatmul.mubr.msk.bf16.vlgmr.msra.gmra.mrb[0].mxu0 %vm129_vm0, %v82_v4  ;;  %1356 = vmatmul.mubr.msk.bf16.vlgmr.msra.gmra.mrb[0].mxu1 %vm129_vm0, %v82_v4  ;;  %v1627_v17 = vld [vmem:[#allocation7 + $0x8] ss:$12 sps:$4 sm:$0xff]   ;;  %v1631_v20 = vld [vmem:[#allocation7 + $0xe0] ss:$12 sps:$4 sm:$0xff]   ;;  %v1614_v22 = vld [vmem:[#allocation7 + $0x78] ss:$12 sps:$4 sm:$0xff]  }
  0x52   :  { %881 = vmatpush1.bf16.msra.mxu0 %v1599_v7  ;;  %1478 = vmatprep.subr.bf16.mxu1 %v1626_v16  ;;  %v1616_v19 = vld [vmem:[#allocation7 + $0x7c] ss:$12 sps:$4 sm:$0xff]   ;;  %v1632_v21 = vld [vmem:[#allocation7 + $0x20] ss:$12 sps:$4 sm:$0xff]   ;;  %v1636_v23 = vld [vmem:[#allocation7 + $0xf8] ss:$12 sps:$4 sm:$0xff]  }
  0x53   :  { %882 = vmatprep.subr.bf16.mxu0 %v1604_v9  ;;  %1479 = vmatpush3.bf16.msra.mxu1 %v1627_v17  ;;  %v1637_v24 = vld [vmem:[#allocation7 + $0x38] ss:$12 sps:$4 sm:$0xff]   ;;  %v1619_v25 = vld [vmem:[#allocation7 + $0x94] ss:$12 sps:$4 sm:$0xff]   ;;  %v1641_v26 = vld [vmem:[#allocation7 + $0x110] ss:$12 sps:$4 sm:$0xff]  }
  0x54   :  { %1480 = vmatprep.subr.bf16.mxu1 %v1631_v20  ;;  %v1642_v27 = vld [vmem:[#allocation7 + $0x50] ss:$12 sps:$4 sm:$0xff]   ;;  %v1622_v29 = vld [vmem:[#allocation7 + $0xac] ss:$12 sps:$4 sm:$0xff]   ;;  %v1646_v30 = vld [vmem:[#allocation7 + $0x128] ss:$12 sps:$4 sm:$0xff]  }
  0x55   :  { %v1617_v28 = vld [vmem:[#allocation7 + $0x90] ss:$12 sps:$4 sm:$0xff]   ;;  %v1647_v31 = vld [vmem:[#allocation7 + $0x68] ss:$12 sps:$4 sm:$0xff]   ;;  %v1651_v34 = vld [vmem:[#allocation7 + $0x140] ss:$12 sps:$4 sm:$0xff]  }
  0x56   :  { %883 = vmatpush1.bf16.msra.mxu0 %v1602_v10  ;;  %v1620_v32 = vld [vmem:[#allocation7 + $0xa8] ss:$12 sps:$4 sm:$0xff]   ;;  %v1625_v33 = vld [vmem:[#allocation7 + $0xc4] ss:$12 sps:$4 sm:$0xff]   ;;  %v1623_v35 = vld [vmem:[#allocation7 + $0xc0] ss:$12 sps:$4 sm:$0xff]  }
  0x57   :  { %884 = vmatprep.subr.bf16.mxu0 %v1607_v11  ;;  %1481 = vmatpush3.bf16.msra.mxu1 %v1632_v21  ;;  %v1652_v36 = vld [vmem:[#allocation7 + $0x80] ss:$12 sps:$4 sm:$0xff]   ;;  %v1630_v37 = vld [vmem:[#allocation7 + $0xdc] ss:$12 sps:$4 sm:$0xff]   ;;  %v1628_v38 = vld [vmem:[#allocation7 + $0xd8] ss:$12 sps:$4 sm:$0xff]  }
  0x58   :  { %1482 = vmatprep.subr.bf16.mxu1 %v1636_v23  ;;  %v1635_v39 = vld [vmem:[#allocation7 + $0xf4] ss:$12 sps:$4 sm:$0xff]   ;;  %v1633_v40 = vld [vmem:[#allocation7 + $0xf0] ss:$12 sps:$4 sm:$0xff]   ;;  %v1640_v41 = vld [vmem:[#allocation7 + $0x10c] ss:$12 sps:$4 sm:$0xff]  }
  0x59   :  { %v1638_v42 = vld [vmem:[#allocation7 + $0x108] ss:$12 sps:$4 sm:$0xff]   ;;  %v1645_v43 = vld [vmem:[#allocation7 + $0x124] ss:$12 sps:$4 sm:$0xff]   ;;  %v1643_v44 = vld [vmem:[#allocation7 + $0x120] ss:$12 sps:$4 sm:$0xff]  }
  0x5a   :  { %885 = vmatpush1.bf16.msra.mxu0 %v1605_v12  ;;  %v1650_v45 = vld [vmem:[#allocation7 + $0x13c] ss:$12 sps:$4 sm:$0xff]   ;;  %v1648_v46 = vld [vmem:[#allocation7 + $0x138] ss:$12 sps:$4 sm:$0xff]   ;;  %v1655_v47 = vld [vmem:[#allocation7 + $0x154] ss:$12 sps:$4 sm:$0xff]  }
  0x5b   :  { %886 = vmatprep.subr.bf16.mxu0 %v1610_v13  ;;  %1483 = vmatpush3.bf16.msra.mxu1 %v1637_v24  ;;  %v1656_v48 = vld [vmem:[#allocation7 + $0x158] ss:$12 sps:$4 sm:$0xff]   ;;  %v1653_v49 = vld [vmem:[#allocation7 + $0x150] ss:$12 sps:$4 sm:$0xff]   ;;  %v1658_v53 = vld [vmem:[#allocation7 + $0x168] ss:$12 sps:$4 sm:$0xff]  }
  0x5c   :  { %1484 = vmatprep.subr.bf16.mxu1 %v1641_v26  ;;  %v1657_v50 = vld [vmem:[#allocation7 + $0x98] ss:$12 sps:$4 sm:$0xff]   ;;  %v1661_v52 = vld [vmem:[#allocation7 + $0x170] ss:$12 sps:$4 sm:$0xff]   ;;  %v1666_v56 = vld [vmem:[#allocation7 + $0x248] ss:$12 sps:$4 sm:$0xff]  }
  0x5d   :  { %v1660_v51 = vld [vmem:[#allocation7 + $0x16c] ss:$12 sps:$4 sm:$0xff]   ;;  %v1662_v54 = vld [vmem:[#allocation7 + $0xb0] ss:$12 sps:$4 sm:$0xff]   ;;  %v91_v59 = vsub.s32 0, %v1973_v58  ;;  %v95_v61 = vsub.s32 1, %v1973_v58 }
  0x5e   :  { %887 = vmatpush1.bf16.msra.mxu0 %v1608_v14  ;;  %v1665_v55 = vld [vmem:[#allocation7 + $0x184] ss:$12 sps:$4 sm:$0xff]   ;;  %v1979_v60 = vld [vmem:[%s2023_s2] sm:$0xf]  ;;  %v103_v62 = vsub.s32 3, %v1973_v58  ;;  %vm1883_vm1 = vmmov 0  }
  0x5f   :  { %888 = vmatprep.subr.bf16.mxu0 %v1613_v15  ;;  %1485 = vmatpush3.bf16.msra.mxu1 %v1642_v27  ;;  %v92_v63 = vrot.slane %v1979_v60, %v91_v59  ;;  %v96_v0 = vrot.slane %v1979_v60, %v95_v61  ;;  %v1663_v16 = vld [vmem:[#allocation7 + $0x180] ss:$12 sps:$4 sm:$0xff]   ;;  %v1667_v17 = vld [vmem:[#allocation7 + $0x188] ss:$12 sps:$4 sm:$0xff]   ;;  %v1668_v23 = vld [vmem:[#allocation7 + $0x198] ss:$12 sps:$4 sm:$0xff]  }
  0x60   :  { %1486 = vmatprep.subr.bf16.mxu1 %v1646_v30  ;;  %v104_v2 = vrot.slane %v1979_v60, %v103_v62  ;;  %v1670_v20 = vld [vmem:[#allocation7 + $0x19c] ss:$12 sps:$4 sm:$0xff]   ;;  %v1671_v21 = vld [vmem:[#allocation7 + $0x260] ss:$12 sps:$4 sm:$0xff]   ;;  %v1676_v26 = vld [vmem:[#allocation7 + $0x278] ss:$12 sps:$4 sm:$0xff]  }
  0x61   :  { %v1672_v24 = vld [vmem:[#allocation7 + $0x1a0] ss:$12 sps:$4 sm:$0xff]   ;;  %v1673_v27 = vld [vmem:[#allocation7 + $0x1b0] ss:$12 sps:$4 sm:$0xff]   ;;  %v1706_v57 = vld [vmem:[#allocation7 + $0x258] ss:$12 sps:$4 sm:$0xff]  }
  0x62   :  { %889 = vmatpush1.bf16.msra.mxu0 %v1611_v18  ;;  %v1681_v30 = vld [vmem:[#allocation7 + $0x290] ss:$12 sps:$4 sm:$0xff]   ;;  %s1884_s8 = smov [#allocation10]  }
  0x63   :  { %890 = vmatprep.subr.bf16.mxu0 %v1616_v19  ;;  %1487 = vmatpush3.bf16.msra.mxu1 %v1647_v31  ;;  %v1678_v31 = vld [vmem:[#allocation7 + $0x1c8] ss:$12 sps:$4 sm:$0xff]   ;;  %v1709_v62 = vld [vmem:[#allocation7 + $0x270] ss:$12 sps:$4 sm:$0xff]   ;;  %s1340_s9 = sshll.u32 %s1884_s8, 4  ;;  %s1341_s9 = int_to_ptr.vmem [resolvable:$true] %s1340_s9 }
  0x64   :  { %1488 = vmatprep.subr.bf16.mxu1 %v1651_v34  ;;  %v1686_v34 = vld [vmem:[#allocation7 + $0x2a8] ss:$12 sps:$4 sm:$0xff]   ;;  %s1841_s10 = scalar_lea.vmem %s1341_s9, 128  ;;  %p1846_p5 = scmp.lt.s32.totalorder %s1341_s9, %s1341_s9 }
  0x65   :  { %p1842_p4 = scmp.ne.s32.totalorder %s1341_s9, %s1841_s10  ;;  %p1847_p6 = scmp.lt.s32.totalorder %s1841_s10, %s1841_s10 }
  0x66   :  { %891 = vmatpush1.bf16.msra.mxu0 %v1614_v22 }
  0x67   :  { %892 = vmatprep.subr.bf16.mxu0 %v1619_v25  ;;  %1489 = vmatpush3.bf16.msra.mxu1 %v1652_v36  ;;  %v1675_v25 = vld [vmem:[#allocation7 + $0x1b4] ss:$12 sps:$4 sm:$0xff]   ;;  %p1848_p7 = por %p1847_p6, %p1846_p5 }
  0x68   :  { %1490 = vmatprep.subr.bf16.mxu1 %v1656_v48  ;;  %v1683_v36 = vld [vmem:[#allocation7 + $0x1e0] ss:$12 sps:$4 sm:$0xff]  }
  0x69   :  { %v1700_v48 = vld [vmem:[#allocation7 + $0x22c] ss:$12 sps:$4 sm:$0xff]   ;;  %p1849_p8 = pnand %p1848_p7, %p1842_p4 }
  0x6a   :  { %893 = vmatpush1.bf16.msra.mxu0 %v1617_v28  ;;  %v1677_v28 = vld [vmem:[#allocation7 + $0x1b8] ss:$12 sps:$4 sm:$0xff]  }
  0x6b   :  { %894 = vmatprep.subr.bf16.mxu0 %v1622_v29  ;;  %1491 = vmatpush3.bf16.msra.mxu1 %v1657_v50  ;;  %v1680_v29 = vld [vmem:[#allocation7 + $0x1cc] ss:$12 sps:$4 sm:$0xff]  }
  0x6c   :  { %1492 = vmatprep.subr.bf16.mxu1 %v1661_v52  ;;  %v1702_v52 = vld [vmem:[#allocation7 + $0x230] ss:$12 sps:$4 sm:$0xff]  }
  0x6e   :  { %895 = vmatpush1.bf16.msra.mxu0 %v1620_v32  ;;  %v1682_v32 = vld [vmem:[#allocation7 + $0x1d0] ss:$12 sps:$4 sm:$0xff]  }
  0x6f   :  { %896 = vmatprep.subr.bf16.mxu0 %v1625_v33  ;;  %1493 = vmatpush3.bf16.msra.mxu1 %v1662_v54  ;;  %v1685_v33 = vld [vmem:[#allocation7 + $0x1e4] ss:$12 sps:$4 sm:$0xff]  }
  0x70   :  { %1500 = vmatprep.subr.bf16.mxu1 %v1666_v56  ;;  %v1708_v56 = vld [vmem:[#allocation7 + $0x25c] ss:$12 sps:$4 sm:$0xff]  }
  0x72   :  { %897 = vmatpush1.bf16.msra.mxu0 %v1623_v35  ;;  %v99_v35 = vsub.s32 2, %v1973_v58  ;;  %v1745_v58 = vld [vmem:[#allocation8 + $0x90] sm:$0xff]  }
  0x73   :  { %898 = vmatprep.subr.bf16.mxu0 %v1630_v37  ;;  %v1687_v37 = vld [vmem:[#allocation7 + $0x1e8] ss:$12 sps:$4 sm:$0xff]  }
  0x76   :  { %899 = vmatpush1.bf16.msra.mxu0 %v1628_v38  ;;  %v1690_v38 = vld [vmem:[#allocation7 + $0x1fc] ss:$12 sps:$4 sm:$0xff]  }
  0x77   :  { %900 = vmatprep.subr.bf16.mxu0 %v1635_v39  ;;  %v1691_v39 = vld [vmem:[#allocation7 + $0x2c0] ss:$12 sps:$4 sm:$0xff]  }
  0x7a   :  { %901 = vmatpush1.bf16.msra.mxu0 %v1633_v40  ;;  %v100_v40 = vrot.slane %v1979_v60, %v99_v35  ;;  %v1711_v60 = vld [vmem:[#allocation7 + $0x274] ss:$12 sps:$4 sm:$0xff]  }
  0x7b   :  { %902 = vmatprep.subr.bf16.mxu0 %v1640_v41  ;;  %v1688_v41 = vld [vmem:[#allocation7 + $0x1f8] ss:$12 sps:$4 sm:$0xff]  }
  0x7e   :  { %903 = vmatpush1.bf16.msra.mxu0 %v1638_v42  ;;  %v1692_v42 = vld [vmem:[#allocation7 + $0x200] ss:$12 sps:$4 sm:$0xff]  }
  0x7f   :  { %904 = vmatprep.subr.bf16.mxu0 %v1645_v43  ;;  %v1695_v43 = vld [vmem:[#allocation7 + $0x214] ss:$12 sps:$4 sm:$0xff]  }
  0x82   :  { %905 = vmatpush1.bf16.msra.mxu0 %v1643_v44  ;;  %v1696_v44 = vld [vmem:[#allocation7 + $0x2d8] ss:$12 sps:$4 sm:$0xff]  }
  0x83   :  { %906 = vmatprep.subr.bf16.mxu0 %v1650_v45 }
  0x86   :  { %907 = vmatpush1.bf16.msra.mxu0 %v1648_v46  ;;  %v1693_v46 = vld [vmem:[#allocation7 + $0x210] ss:$12 sps:$4 sm:$0xff]  }
  0x87   :  { %908 = vmatprep.subr.bf16.mxu0 %v1655_v47  ;;  %v1697_v47 = vld [vmem:[#allocation7 + $0x218] ss:$12 sps:$4 sm:$0xff]  }
  0x8a   :  { %909 = vmatpush1.bf16.msra.mxu0 %v1653_v49  ;;  %v1701_v49 = vld [vmem:[#allocation7 + $0x2f0] ss:$12 sps:$4 sm:$0xff]  }
  0x8b   :  { %910 = vmatprep.subr.bf16.mxu0 %v1660_v51  ;;  %v1698_v51 = vld [vmem:[#allocation7 + $0x228] ss:$12 sps:$4 sm:$0xff]  }
  0x8e   :  { %911 = vmatpush1.bf16.msra.mxu0 %v1658_v53  ;;  %v1705_v53 = vld [vmem:[#allocation7 + $0x244] ss:$12 sps:$4 sm:$0xff]  }
  0x8f   :  { %921 = vmatprep.subr.bf16.mxu0 %v1665_v55  ;;  %v1703_v55 = vld [vmem:[#allocation7 + $0x240] ss:$12 sps:$4 sm:$0xff]  }
 0x124   :  { %v167_v1 = vpop.f32.mrb[0].mxu0  ;;  %v1990_v7 = vpop.f32.mrb[0].mxu1 }
 0x125   :  { %v168_v3 = vadd.f32 %v167_v1, %v92_v63  ;;  %v169_v4 = vpop.f32.mrb[1].mxu0  ;;  %v210_v10 = vpop.f32.mrb[1].mxu1  ;;  %v209_v45 = vadd.f32 %v1990_v7, %v100_v40  ;;  %v1714_v63 = vld [vmem:[#allocation7 + $0x28c] ss:$12 sps:$4 sm:$0xff]   ;;  %v1717_v1 = vld [vmem:[#allocation7 + $0x2a4] ss:$12 sps:$4 sm:$0xff]  }
 0x126   :  { %v170_v5 = vadd.f32 %v169_v4, %v96_v0  ;;  %v171_v6 = vpop.f32.mrb[2].mxu0  ;;  %v211_v12 = vadd.f32 %v210_v10, %v104_v2  ;;  %v212_v13 = vpop.f32.mrb[2].mxu1  ;;  %v1712_v0 = vld [vmem:[#allocation7 + $0x288] ss:$12 sps:$4 sm:$0xff]   ;;  %v1715_v2 = vld [vmem:[#allocation7 + $0x2a0] ss:$12 sps:$4 sm:$0xff]  }
 0x127   :  { %v215_v8 = vmax.f32 %v168_v3, 0.0  ;;  %v172_v9 = vpop.f32.mrb[3].mxu0  ;;  %v213_v14 = vpop.f32.mrb[3].mxu1  ;;  %v217_v50 = vmax.f32 %v209_v45, 0.0  ;;  %v1720_v3 = vld [vmem:[#allocation7 + $0x2bc] ss:$12 sps:$4 sm:$0xff]  }
 0x128   :  { %v216_v11 = vmax.f32 %v170_v5, 0.0  ;;  %v218_v18 = vmax.f32 %v211_v12, 0.0  ;;  %v1718_v4 = vld [vmem:[#allocation7 + $0x2b8] ss:$12 sps:$4 sm:$0xff]   ;;  %v1723_v5 = vld [vmem:[#allocation7 + $0x2d4] ss:$12 sps:$4 sm:$0xff]  }
 0x129   :  { %v219_v19 = vpack.c.bf16 %v215_v8, %v215_v8  ;;  %v221_v54 = vpack.c.bf16 %v217_v50, %v217_v50  ;;  %v1721_v6 = vld [vmem:[#allocation7 + $0x2d0] ss:$12 sps:$4 sm:$0xff]   ;;  %v1726_v7 = vld [vmem:[#allocation7 + $0x2ec] ss:$12 sps:$4 sm:$0xff]   ;;  %v1724_v8 = vld [vmem:[#allocation7 + $0x2e8] ss:$12 sps:$4 sm:$0xff]  }
 0x12a   :  { %v220_v15 = vpack.c.bf16 %v216_v11, %v216_v11  ;;  %v222_v22 = vpack.c.bf16 %v218_v18, %v218_v18  ;;  %v1727_v9 = vld [vmem:[#allocation8 + $0x40] sm:$0xff]   ;;  %v1729_v11 = vld [vmem:[#allocation8 + $0x48] sm:$0xff]   ;;  %v1731_v13 = vld [vmem:[#allocation8 + $0x50] sm:$0xff]  }
 0x12b   :  { %v1728_v10 = vld [vmem:[#allocation8] sm:$0xff]   ;;  %v1730_v12 = vld [vmem:[#allocation8 + $0x8] sm:$0xff]   ;;  %v1732_v14 = vld [vmem:[#allocation8 + $0x10] sm:$0xff]  }
 0x12c   :  { %912 = vmatprep.mubr.bf16.mxu0 %v220_v15  ;;  %994 = vmatprep.mubr.bf16.mxu1 %v220_v15  ;;  %v1733_v15 = vld [vmem:[#allocation8 + $0x58] sm:$0xff]   ;;  %v1736_v18 = vld [vmem:[#allocation8 + $0x20] sm:$0xff]  }
 0x12d   :  { %913 = vmatmul.mubr.bf16.vlgmr.msra.gmra.mrb[4].mxu0 %v219_v19  ;;  %995 = vmatmul.mubr.bf16.vlgmr.msra.gmra.mrb[4].mxu1 %v219_v19  ;;  %v1737_v19 = vld [vmem:[#allocation8 + $0x68] sm:$0xff]  }
 0x12e   :  { %922 = vmatpush1.bf16.msra.mxu0 %v1663_v16  ;;  %1501 = vmatpush3.bf16.msra.mxu1 %v1667_v17  ;;  %v1734_v16 = vld [vmem:[#allocation8 + $0x18] sm:$0xff]   ;;  %v1735_v17 = vld [vmem:[#allocation8 + $0x60] sm:$0xff]  }
 0x12f   :  { %923 = vmatprep.subr.bf16.mxu0 %v1670_v20  ;;  %1502 = vmatprep.subr.bf16.mxu1 %v1671_v21  ;;  %v1738_v20 = vld [vmem:[#allocation8 + $0x28] sm:$0xff]   ;;  %v1739_v21 = vld [vmem:[#allocation8 + $0x70] sm:$0xff]  }
 0x130   :  { %1034 = vmatprep.mubr.bf16.mxu1 %v222_v22  ;;  %953 = vmatprep.mubr.bf16.mxu0 %v222_v22  ;;  %v1740_v22 = vld [vmem:[#allocation8 + $0x30] sm:$0xff]  }
 0x132   :  { %924 = vmatpush1.bf16.msra.mxu0 %v1668_v23  ;;  %1503 = vmatpush3.bf16.msra.mxu1 %v1672_v24  ;;  %v1741_v23 = vld [vmem:[#allocation8 + $0x78] sm:$0xff]  }
 0x133   :  { %925 = vmatprep.subr.bf16.mxu0 %v1675_v25  ;;  %1504 = vmatprep.subr.bf16.mxu1 %v1676_v26  ;;  %v1742_v24 = vld [vmem:[#allocation8 + $0x38] sm:$0xff]   ;;  %v1882_v25 = vmov 0.0  }
 0x136   :  { %926 = vmatpush1.bf16.msra.mxu0 %v1673_v27  ;;  %1505 = vmatpush3.bf16.msra.mxu1 %v1677_v28 }
 0x137   :  { %927 = vmatprep.subr.bf16.mxu0 %v1680_v29  ;;  %1506 = vmatprep.subr.bf16.mxu1 %v1681_v30 }
 0x13a   :  { %928 = vmatpush1.bf16.msra.mxu0 %v1678_v31  ;;  %1507 = vmatpush3.bf16.msra.mxu1 %v1682_v32  ;;  %v351_v31 = vld [vmem:[%s2025_s4] sm:$0x7] }
 0x13b   :  { %929 = vmatprep.subr.bf16.mxu0 %v1685_v33  ;;  %1508 = vmatprep.subr.bf16.mxu1 %v1686_v34  ;;  %v364_v32 = vrot.slane %v351_v31, %v99_v35 }
 0x13e   :  { %930 = vmatpush1.bf16.msra.mxu0 %v1683_v36  ;;  %1509 = vmatpush3.bf16.msra.mxu1 %v1687_v37 }
 0x13f   :  { %931 = vmatprep.subr.bf16.mxu0 %v1690_v38  ;;  %1510 = vmatprep.subr.bf16.mxu1 %v1691_v39 }
 0x142   :  { %932 = vmatpush1.bf16.msra.mxu0 %v1688_v41  ;;  %1511 = vmatpush3.bf16.msra.mxu1 %v1692_v42  ;;  %v356_v41 = vrot.slane %v351_v31, %v91_v59  ;;  %v360_v42 = vrot.slane %v351_v31, %v95_v61  ;;  %v1746_v59 = vld [vmem:[#allocation8 + $0x98] sm:$0xff]   ;;  %v1747_v61 = vld [vmem:[#allocation8 + $0xa0] sm:$0xff]  }
 0x143   :  { %933 = vmatprep.subr.bf16.mxu0 %v1695_v43  ;;  %1512 = vmatprep.subr.bf16.mxu1 %v1696_v44 }
 0x146   :  { %934 = vmatpush1.bf16.msra.mxu0 %v1693_v46  ;;  %1513 = vmatpush3.bf16.msra.mxu1 %v1697_v47 }
 0x147   :  { %935 = vmatprep.subr.bf16.mxu0 %v1700_v48  ;;  %1514 = vmatprep.subr.bf16.mxu1 %v1701_v49 }
 0x14a   :  { %936 = vmatpush1.bf16.msra.mxu0 %v1698_v51  ;;  %1515 = vmatpush3.bf16.msra.mxu1 %v1702_v52  ;;  %v1743_v51 = vld [vmem:[#allocation8 + $0x80] sm:$0xff]  }
 0x14b   :  { %937 = vmatprep.subr.bf16.mxu0 %v1705_v53  ;;  %1522 = vmatprep.subr.bf16.mxu1 %v1727_v9  ;;  %v1744_v53 = vld [vmem:[#allocation8 + $0x88] sm:$0xff]  }
 0x14d   :  { %1035 = vmatmul.mubr.bf16.vlgmr.msra.gmra.mrb[8].mxu1 %v221_v54 }
 0x14e   :  { %938 = vmatpush1.bf16.msra.mxu0 %v1703_v55  ;;  %1523 = vmatpush3.bf16.msra.mxu1 %v1728_v10  ;;  %v1749_v55 = vld [vmem:[#allocation8 + $0xb0] sm:$0xff]  }
 0x14f   :  { %939 = vmatprep.subr.bf16.mxu0 %v1708_v56  ;;  %1524 = vmatprep.subr.bf16.mxu1 %v1729_v11  ;;  %v1750_v56 = vld [vmem:[#allocation8 + $0xb8] sm:$0xff]  }
 0x152   :  { %940 = vmatpush1.bf16.msra.mxu0 %v1706_v57  ;;  %1525 = vmatpush3.bf16.msra.mxu1 %v1730_v12 }
 0x153   :  { %941 = vmatprep.subr.bf16.mxu0 %v1711_v60  ;;  %1526 = vmatprep.subr.bf16.mxu1 %v1731_v13 }
 0x156   :  { %942 = vmatpush1.bf16.msra.mxu0 %v1709_v62  ;;  %1527 = vmatpush3.bf16.msra.mxu1 %v1732_v14 }
 0x157   :  { %943 = vmatprep.subr.bf16.mxu0 %v1714_v63  ;;  %1528 = vmatprep.subr.bf16.mxu1 %v1733_v15 }
 0x15a   :  { %944 = vmatpush1.bf16.msra.mxu0 %v1712_v0  ;;  %1529 = vmatpush3.bf16.msra.mxu1 %v1734_v16 }
 0x15b   :  { %945 = vmatprep.subr.bf16.mxu0 %v1717_v1  ;;  %1530 = vmatprep.subr.bf16.mxu1 %v1735_v17 }
 0x15e   :  { %946 = vmatpush1.bf16.msra.mxu0 %v1715_v2  ;;  %1531 = vmatpush3.bf16.msra.mxu1 %v1736_v18 }
 0x15f   :  { %947 = vmatprep.subr.bf16.mxu0 %v1720_v3  ;;  %1532 = vmatprep.subr.bf16.mxu1 %v1737_v19  ;;  %v1453_v3 = vld [vmem:[%s2027_s6] ss:$0 sm:$0xff] }
 0x162   :  { %948 = vmatpush1.bf16.msra.mxu0 %v1718_v4  ;;  %1533 = vmatpush3.bf16.msra.mxu1 %v1738_v20 }
 0x163   :  { %949 = vmatprep.subr.bf16.mxu0 %v1723_v5  ;;  %1534 = vmatprep.subr.bf16.mxu1 %v1739_v21 }
 0x166   :  { %950 = vmatpush1.bf16.msra.mxu0 %v1721_v6  ;;  %1535 = vmatpush3.bf16.msra.mxu1 %v1740_v22 }
 0x167   :  { %951 = vmatprep.subr.bf16.mxu0 %v1726_v7  ;;  %1536 = vmatprep.subr.bf16.mxu1 %v1741_v23 }
 0x16a   :  { %952 = vmatpush1.bf16.msra.mxu0 %v1724_v8  ;;  %1537 = vmatpush3.bf16.msra.mxu1 %v1742_v24 }
 0x16b   :  { %1553 = vmatprep.subr.bf16.mxu1 %v1882_v25 }
 0x16d   :  { %954 = vmatmul.mubr.bf16.vlgmr.msra.gmra.mrb[4].mxu0 %v221_v54  ;;  %v1748_v54 = vld [vmem:[#allocation8 + $0xa8] sm:$0xff]  }
 0x200   :  { %v1494_v26 = vpop.f32.mrb[4].mxu1 }
 0x201   :  { %v1495_v27 = vpop.f32.mrb[5].mxu1 }
 0x202   :  { %v1496_v28 = vadd.f32 %v1495_v27, %v1494_v26  ;;  %v1497_v29 = vpop.f32.mrb[6].mxu1 }
 0x203   :  { %v1498_v30 = vpop.f32.mrb[7].mxu1 }
 0x204   :  { %v997_v36 = vadd.f32 %v1496_v28, %v364_v32 }
 0x220   :  { %v1516_v33 = vpop.f32.mrb[8].mxu1 }
 0x221   :  { %v1517_v34 = vpop.f32.mrb[9].mxu1 }
 0x222   :  { %v1518_v37 = vadd.f32 %v1517_v34, %v1516_v33  ;;  %v1519_v38 = vpop.f32.mrb[10].mxu1 }
 0x223   :  { %v1520_v39 = vpop.f32.mrb[11].mxu1 }
 0x224   :  { %v1037_v40 = vadd.f32 %v1518_v37, %v997_v36 }
 0x226   :  { %v1044_v57 = vmax.f32 %v1037_v40, 0.0 }
 0x228   :  { %v1047_v60 = vpack.c.bf16 %v1044_v57, %v1044_v57 }
 0x240   :  { %v955_v43 = vpop.f32.mrb[4].mxu0 }
 0x241   :  { %v1573_v44 = vadd.f32 %v955_v43, %v356_v41  ;;  %v957_v45 = vpop.f32.mrb[5].mxu0 }
 0x242   :  { %v1574_v46 = vadd.f32 %v957_v45, %v360_v42  ;;  %v959_v47 = vpop.f32.mrb[6].mxu0 }
 0x243   :  { %v1042_v48 = vmax.f32 %v1573_v44, 0.0  ;;  %v960_v35 = vpop.f32.mrb[7].mxu0 }
 0x244   :  { %v1043_v49 = vmax.f32 %v1574_v46, 0.0 }
 0x245   :  { %v1045_v52 = vpack.c.bf16 %v1042_v48, %v1042_v48 }
 0x246   :  { %v1046_v50 = vpack.c.bf16 %v1043_v49, %v1043_v49 }
 0x248   :  { %1279 = vmatprep.mubr.bf16.mxu1 %v1046_v50 }
 0x249   :  { %1280 = vmatmul.mubr.bf16.vlgmr.msra.gmra.mrb[12].mxu1 %v1045_v52 }
 0x24a   :  { %1554 = vmatpush3.bf16.msra.mxu1 %v1743_v51  ;;  %1569 = vmatprep.mubr.msk.bf16.mxu1 %vm1883_vm1, %v1882_v25 }
 0x24b   :  { %1555 = vmatprep.subr.bf16.mxu1 %v1882_v25 }
 0x24e   :  { %1556 = vmatpush3.bf16.msra.mxu1 %v1744_v53 }
 0x24f   :  { %1557 = vmatprep.subr.bf16.mxu1 %v1882_v25 }
 0x252   :  { %1558 = vmatpush3.bf16.msra.mxu1 %v1745_v58 }
 0x253   :  { %1559 = vmatprep.subr.bf16.mxu1 %v1882_v25 }
 0x256   :  { %1560 = vmatpush3.bf16.msra.mxu1 %v1746_v59 }
 0x257   :  { %1561 = vmatprep.subr.bf16.mxu1 %v1882_v25 }
 0x25a   :  { %1562 = vmatpush3.bf16.msra.mxu1 %v1747_v61 }
 0x25b   :  { %1563 = vmatprep.subr.bf16.mxu1 %v1882_v25 }
 0x25e   :  { %1564 = vmatpush3.bf16.msra.mxu1 %v1748_v54 }
 0x25f   :  { %1565 = vmatprep.subr.bf16.mxu1 %v1882_v25 }
 0x262   :  { %1566 = vmatpush3.bf16.msra.mxu1 %v1749_v55 }
 0x263   :  { %1567 = vmatprep.subr.bf16.mxu1 %v1882_v25 }
 0x266   :  { %1568 = vmatpush3.bf16.msra.mxu1 %v1750_v56 }
 0x269   :  { %1570 = vmatmul.mubr.bf16.vlgmr.msra.gmra.mrb[16].mxu1 %v1047_v60 }
 0x31c   :  { %v1538_v62 = vpop.f32.mrb[12].mxu1 }
 0x31d   :  { %v1539_v63 = vpop.f32.mrb[13].mxu1 }
 0x31e   :  { %v1540_v0 = vadd.f32 %v1539_v63, %v1538_v62  ;;  %v1541_v1 = vpop.f32.mrb[14].mxu1 }
 0x31f   :  { %v1542_v2 = vpop.f32.mrb[15].mxu1 }
 0x320   :  { %v1282_v4 = vadd.f32 %v1540_v0, %v1453_v3 }
 0x33c   :  { %v1321_v5 = vpop.f32.mrb[16].mxu1 }
 0x33d   :  { %v1322_v6 = vadd.f32 %v1321_v5, %v1282_v4  ;;  %v1571_v7 = vpop.f32.mrb[17].mxu1 }
 0x33e   :  { %v1324_v8 = vpop.f32.mrb[18].mxu1 }
 0x33f   :  { %v1572_v9 = vpop.f32.mrb[19].mxu1  ;;  %v1327_v10 = vmul.f32 %v1322_v6, %v1322_v6 }
 0x341   :  { %1328 = vadd.xlane.f32.xlu0 %v1327_v10 }
 0x3ce   :  { %v1329_v11 = vpop.xlane.xlu0 %1328 }
 0x3cf   :  { %v1330_v12 = vmax.f32 %v1329_v11, 1e-24 }
 0x3d1   :  { %1751 = vrsqrt.f32 %v1330_v12 }
 0x3db   :  { %v1752_v13 = vpop.eup %1751 }
 0x3dc   :  { %v1332_v14 = vmul.f32 %v1752_v13, %v1322_v6 }
 0x3de   :  { %1333 = vst [vmem:[#allocation10] sm:$0xff] %v1332_v14 }
 0x3df   :  { %1852 = shalt.err (!%p1849_p8)
}
 0x3e0   :  { %s1853_s12 = scalar_lea.hbm %s2028_s7, 128 }
 0x3e1   :  { %p1854_p9 = scmp.ne.s32.totalorder %s2028_s7, %s1853_s12  ;;  %p1857_p10 = scmp.lt.u32.totalorder %s1853_s12, %s2028_s7 }
 0x3e3   :  { %p1859_p11 = pnand %p1857_p10, %p1854_p9 }
 0x3e5   :  { %1862 = shalt.err (!%p1859_p11)
}
 0x3e6   :  { %1343 = dma.vmem_to_hbm [thread:$0]  %s1341_s9, 128, %s2028_s7, [#allocation4]  }
 0x3e7   :  { %1869 = dma.done.wait [#allocation4], 128  }
 0x3e8   :  { %1870 = vsyncadd [#allocation4], 4294967168 }
 0x3e9   :  { %1347 = vsyncpa [#allocation3], 1 }
 0x3ea   :  { %1348 = vsyncpa [#allocation6], 1 }
 0x3eb   :  { %1349 = vsyncpa [#allocation9], 1 }
 0x3ec   :  { %1350 = vsyncpa [#allocation4], 1 }

</bundles_post_ra>
